<compile_context>
chip_gen: v7x
topology: tpu7x:2x2x1
jax: 0.10.0
libtpu: 0.0.40
codegen_flags: <defaults>
</compile_context>

<pallas_src>
import math
from functools import partial

import jax
import jax.numpy as jnp
from jax import lax
from jax.experimental import pallas as pl
from jax.experimental.pallas import tpu as pltpu

_LANE = 128
_EPS = 1e-5  # PyTorch nn.LayerNorm default


def _round_up(n, m):
    return ((n + m - 1) // m) * m


def _tpu_vmem_bytes():
    """Physical VMEM per core (generation-aware); conservative fallback."""
    try:
        cap = int(pltpu.get_tpu_info().vmem_capacity_bytes)
        if cap >= 32 * 1024 * 1024:
            return cap
    except Exception:
        pass
    return 64 * 1024 * 1024  # v7x per-TensorCore VMEM (safe everywhere)


def _row_align(*dtypes):
    """Second-minor tile multiple: 8 rows for 32-bit, 16 for bf16, 32 for int8."""
    a = 8
    for dt in dtypes:
        it = jnp.dtype(dt).itemsize
        a = max(a, 8 * max(1, 4 // it))
    return a


# ---------------------------------------------------------------------------
# Pallas kernel: fused smart-projection MLP (Linear+LN+GELU+Linear+LN)
# ---------------------------------------------------------------------------
def _masked_layernorm(v, gamma, beta, mask, true_dim, eps):
    """LayerNorm over the last axis, ignoring zero-padded columns >= true_dim.

    Padded columns of `v` are exactly zero by construction (zero-padded x,
    weights and biases), so the mean only needs the correct divisor; the
    variance masks (v - mu) in the padded region via a precomputed lane mask
    (single vmul instead of iota+cmp+select).  `mask` is None when the feature
    dim is already lane-aligned (no padding).
    """
    if mask is None:
        mu = jnp.mean(v, axis=-1, keepdims=True)
        c = v - mu
        var = jnp.mean(c * c, axis=-1, keepdims=True)
    else:
        inv_n = 1.0 / float(true_dim)
        mu = jnp.sum(v, axis=-1, keepdims=True) * inv_n
        c = (v - mu) * mask
        var = jnp.sum(c * c, axis=-1, keepdims=True) * inv_n
    return c * lax.rsqrt(var + eps) * gamma + beta


def _smart_projection_kernel(x_ref, w1_ref, b1_ref, g1_ref, be1_ref, m1_ref,
                             w2_ref, b2_ref, g2_ref, be2_ref, m2_ref,
                             o_ref, acc_ref=None, *,
                             hidden_true, d_out_true, matmul_dtype,
                             gelu_approximate):

    def finish(h_pre):
        # ---- bias + LayerNorm(H) (f32 math; padded columns masked) ----
        h = h_pre + b1_ref[...]
        mask1 = m1_ref[...] if hidden_true != h.shape[-1] else None
        h = _masked_layernorm(h, g1_ref[...], be1_ref[...], mask1,
                              hidden_true, _EPS)

        # ---- GELU (PyTorch default: exact erf form) ----
        if gelu_approximate:
            # tanh form lowers to the EUP (off the VALU slot); slight deviation
            # from torch's exact erf GELU — opt-in only.
            c0 = math.sqrt(2.0 / math.pi)
            h = 0.5 * h * (1.0 + jnp.tanh(c0 * (h + 0.044715 * (h * h * h))))
        else:
            h = 0.5 * h * (1.0 + lax.erf(h * (1.0 / math.sqrt(2.0))))

        # ---- Dropout(0.1): identity in eval / inference semantics ----
        # TODO(synk): training-mode dropout (stateful PRNG mask) intentionally omitted.

        # ---- Linear(H -> D_out): bf16 MXU operands, f32 accumulation ----
        y = jnp.dot(h.astype(matmul_dtype), w2_ref[...],
                    preferred_element_type=jnp.float32) + b2_ref[...]

        # ---- LayerNorm(D_out) ----
        mask2 = m2_ref[...] if d_out_true != y.shape[-1] else None
        y = _masked_layernorm(y, g2_ref[...], be2_ref[...], mask2,
                              d_out_true, _EPS)
        o_ref[...] = y.astype(o_ref.dtype)

    # ---- Linear(D_in -> H): partial product for this K block (bf16 -> f32) ----
    partial_h = jnp.dot(x_ref[...], w1_ref[...],
                        preferred_element_type=jnp.float32)

    if acc_ref is None:
        # Single K block: fused straight through.
        finish(partial_h)
    else:
        # K-tiled contraction over D_in (large-W1 path, e.g. v7x 64 MiB VMEM).
        k = pl.program_id(1)

        @pl.when(k == 0)
        def _():
            acc_ref[...] = partial_h

        @pl.when(k != 0)
        def _():
            acc_ref[...] += partial_h

        @pl.when(k == pl.num_programs(1) - 1)
        def _():
            finish(acc_ref[...])


# ---------------------------------------------------------------------------
# Tile / VMEM selection (generation-aware)
# ---------------------------------------------------------------------------
def _select_tiles(M, d_in_p, hid_p, d_out_p, x_itemsize, out_itemsize,
                  w_itemsize, tile_m_req, row_align, max_tile_k=None):
    phys = _tpu_vmem_bytes()
    budget = max(32 * 1024 * 1024,
                 min(int(phys * 0.85), phys - 16 * 1024 * 1024))

    # Small single-buffered per-feature params (bias, gamma, beta, mask) in f32.
    small_bytes = 4 * 4 * (hid_p + d_out_p)
    w2_bytes = hid_p * d_out_p * w_itemsize          # W2 resident, single buffer

    # --- tile_k: K-tile the first contraction when W1 alone would eat the budget.
    n_lanes = d_in_p // _LANE
    tile_k = _LANE
    for j in range(1, n_lanes + 1):
        if n_lanes % j:
            continue                                  # need exact division of d_in_p
        tk = (n_lanes // j) * _LANE
        if max_tile_k is not None and tk > max(max_tile_k, _LANE):
            continue
        w1_bufs = 1 if tk == d_in_p else 2            # double-buffered only if k-tiled
        const_bytes = w1_bufs * tk * hid_p * w_itemsize + w2_bytes + small_bytes
        if const_bytes <= budget // 2 or tk == _LANE:
            tile_k = tk
            break
    k_tiles = d_in_p // tile_k
    w1_bufs = 1 if k_tiles == 1 else 2
    const_bytes = w1_bufs * tile_k * hid_p * w_itemsize + w2_bytes + small_bytes

    # --- tile_m: as tall as the row count / remaining budget allows.
    tile_m = max(row_align, min(tile_m_req, _round_up(max(M, 1), row_align)))
    tile_m = _round_up(tile_m, row_align)

    def total(tm):
        per_row = (2 * tile_k * x_itemsize                 # double-buffered x tile (bf16)
                   + 2 * d_out_p * out_itemsize            # double-buffered out tile
                   + (hid_p * 4 if k_tiles > 1 else 0)     # f32 K-accumulator scratch
                   + 2 * (3 * hid_p + 2 * d_out_p) * 4)    # live f32 temps, 2x headroom
        return const_bytes + tm * per_row

    while tile_m > row_align and total(tile_m) > budget:
        tile_m = max(row_align, _round_up(tile_m // 2, row_align))

    vmem_limit = int(min(phys, max(32 * 1024 * 1024, int(total(tile_m) * 1.25))))
    return tile_m, tile_k, k_tiles, vmem_limit


# ---------------------------------------------------------------------------
# Host wrapper around the pallas_call
# ---------------------------------------------------------------------------
def smart_projection_pallas(x2d, padded_params, dims, *, tile_m=512,
                            matmul_dtype=jnp.bfloat16, max_tile_k=None,
                            gelu_approximate=False):
    """x2d: (M, D_in) feature-last rows. Returns (M, D_out_true)."""
    (w1, b1, g1, be1, m1, w2, b2, g2, be2, m2) = padded_params
    hidden_true = dims["hidden"]
    d_out_true = dims["d_out"]

    M, d_in = x2d.shape
    d_in_p, hid_p = w1.shape
    d_out_p = w2.shape[1]
    out_dtype = x2d.dtype

    # Cast x to the MXU operand dtype on the host: halves x HBM traffic + VMEM.
    x2d = x2d.astype(matmul_dtype)

    row_align = _row_align(matmul_dtype, out_dtype)
    tile_m_eff, tile_k, k_tiles, vmem_limit = _select_tiles(
        M, d_in_p, hid_p, d_out_p,
        jnp.dtype(matmul_dtype).itemsize, jnp.dtype(out_dtype).itemsize,
        jnp.dtype(w1.dtype).itemsize, tile_m, row_align, max_tile_k)

    # Single fused pad: rows up to a tile multiple, features up to d_in_p.
    M_pad = _round_up(max(M, 1), tile_m_eff)
    if M_pad != M or d_in_p != d_in:
        x2d = jnp.pad(x2d, ((0, M_pad - M), (0, d_in_p - d_in)))

    grid = (M_pad // tile_m_eff, k_tiles)

    kernel = partial(_smart_projection_kernel,
                     hidden_true=hidden_true, d_out_true=d_out_true,
                     matmul_dtype=matmul_dtype,
                     gelu_approximate=gelu_approximate)

    def run(single_buffer_consts):
        const_kwargs = ({"pipeline_mode": pl.Buffered(1)}
                        if (single_buffer_consts and hasattr(pl, "Buffered"))
                        else {})

        def const_spec(shape):
            return pl.BlockSpec(shape, lambda i, k: (0, 0), **const_kwargs)

        # W1 is invariant only when not K-tiled.
        w1_kwargs = const_kwargs if k_tiles == 1 else {}
        in_specs = [
            pl.BlockSpec((tile_m_eff, tile_k), lambda i, k: (i, k)),          # x rows
            pl.BlockSpec((tile_k, hid_p), lambda i, k: (k, 0), **w1_kwargs),  # W1 (bf16)
            const_spec((1, hid_p)),        # b1
            const_spec((1, hid_p)),        # ln1 gamma
            const_spec((1, hid_p)),        # ln1 beta
            const_spec((1, hid_p)),        # ln1 lane mask
            const_spec((hid_p, d_out_p)),  # W2 (bf16)
            const_spec((1, d_out_p)),      # b2
            const_spec((1, d_out_p)),      # ln2 gamma
            const_spec((1, d_out_p)),      # ln2 beta
            const_spec((1, d_out_p)),      # ln2 lane mask
        ]
        scratch = ([pltpu.VMEM((tile_m_eff, hid_p), jnp.float32)]
                   if k_tiles > 1 else [])

        return pl.pallas_call(
            kernel,
            out_shape=jax.ShapeDtypeStruct((M_pad, d_out_p), out_dtype),
            grid_spec=pltpu.PrefetchScalarGridSpec(
                num_scalar_prefetch=0,
                grid=grid,
                in_specs=in_specs,
                out_specs=pl.BlockSpec((tile_m_eff, d_out_p),
                                       lambda i, k: (i, 0)),
                scratch_shapes=scratch),
            compiler_params=pltpu.CompilerParams(
                dimension_semantics=("parallel", "arbitrary"),
                vmem_limit_bytes=vmem_limit),
        )(x2d, w1, b1, g1, be1, m1, w2, b2, g2, be2, m2)

    try:
        out = run(True)
    except Exception:
        # TODO(synk): drop fallback once pl.Buffered(1) is guaranteed on all jax builds.
        out = run(False)

    return out[:M, :d_out_true]


# ---------------------------------------------------------------------------
# Host-side wrapper mimicking IntelligentDimensionAdapter (glue only)
# ---------------------------------------------------------------------------
class IntelligentDimensionAdapterPallas:
    def __init__(self, default_strategy="smart_projection", cache_size=100,
                 seed=0, matmul_dtype=jnp.bfloat16):
        self.default_strategy = default_strategy
        self.cache_size = cache_size
        self.matmul_dtype = matmul_dtype
        self.component_specs = {}
        self.transformation_cache = {}   # key -> {padded, true, dims}
        self.usage_stats = {}
        self._key = jax.random.PRNGKey(seed)

    # -- registry / optimal-dim logic (no tensor compute) --------------------
    def register_component(self, name, expected_input_range, preferred_dim=None):
        self.component_specs[name] = dict(
            expected_input_range=expected_input_range,
            preferred_dim=preferred_dim)

    def get_optimal_dimension(self, component_name, x):
        input_dim = x.shape[-1]
        if component_name not in self.component_specs:
            self.register_component(
                component_name, (input_dim // 2, input_dim * 2), input_dim)
        spec = self.component_specs[component_name]
        lo, hi = spec["expected_input_range"]
        if lo <= input_dim <= hi:
            return input_dim
        if spec["preferred_dim"] is not None:
            return spec["preferred_dim"]
        return lo if input_dim < lo else hi

    # -- deterministic parameter construction ---------------------------------
    def _next_key(self):
        self._key, sub = jax.random.split(self._key)
        return sub

    def _init_linear(self, d_in, d_out):
        # PyTorch nn.Linear default bound 1/sqrt(fan_in); deterministic here.
        bound = 1.0 / math.sqrt(d_in)
        kw, kb = jax.random.split(self._next_key())
        w = jax.random.uniform(kw, (d_in, d_out), jnp.float32, -bound, bound)
        b = jax.random.uniform(kb, (1, d_out), jnp.float32, -bound, bound)
        return w, b

    def _make_smart_projection_params(self, d_in, d_out):
        if d_in > d_out:
            hidden = max(d_out * 2, d_in // 2)
        else:
            hidden = min(d_out // 2, d_in * 2)
        w1, b1 = self._init_linear(d_in, hidden)
        g1 = jnp.ones((1, hidden), jnp.float32)
        be1 = jnp.zeros((1, hidden), jnp.float32)
        w2, b2 = self._init_linear(hidden, d_out)
        g2 = jnp.ones((1, d_out), jnp.float32)
        be2 = jnp.zeros((1, d_out), jnp.float32)
        true_params = (w1, b1, g1, be1, w2, b2, g2, be2)

        # Zero-pad feature dims to multiples of 128 for lane-dense MXU/VPU work.
        d_in_p = _round_up(d_in, _LANE)
        hid_p = _round_up(hidden, _LANE)
        d_out_p = _round_up(d_out, _LANE)
        pad2 = lambda a, r, c: jnp.pad(
            a, ((0, r - a.shape[0]), (0, c - a.shape[1])))
        # Precomputed f32 lane masks for the masked LayerNorms (1 on true cols).
        m1 = (jnp.arange(hid_p) < hidden).astype(jnp.float32).reshape(1, hid_p)
        m2 = (jnp.arange(d_out_p) < d_out).astype(jnp.float32).reshape(1, d_out_p)
        padded = (
            pad2(w1, d_in_p, hid_p).astype(self.matmul_dtype),
            pad2(b1, 1, hid_p),
            pad2(g1, 1, hid_p),
            pad2(be1, 1, hid_p),
            m1,
            pad2(w2, hid_p, d_out_p).astype(self.matmul_dtype),
            pad2(b2, 1, d_out_p),
            pad2(g2, 1, d_out_p),
            pad2(be2, 1, d_out_p),
            m2,
        )
        dims = dict(d_in=d_in, hidden=hidden, d_out=d_out)
        return dict(padded=padded, true=true_params, dims=dims)

    # -- adapt_tensor (forward) -----------------------------------------------
    def adapt_tensor(self, x, component_name, target_dim=None,
                     source_component="unknown", strategy=None):
        strategy = strategy or self.default_strategy
        if target_dim is None:
            target_dim = self.get_optimal_dimension(component_name, x)
        d_in = x.shape[-1]
        if d_in == target_dim:
            return x  # nn.Identity()

        key = f"{source_component}_{component_name}_{d_in}_{target_dim}"
        if key in self.transformation_cache:
            entry = self.transformation_cache[key]
            self.usage_stats[key] += 1
        else:
            # Only smart_projection is kernelized here (the module default).
            # TODO(synk): attention_based / residual_adaptation strategies not kernelized.
            entry = self._make_smart_projection_params(d_in, target_dim)
            if len(self.transformation_cache) >= self.cache_size:
                lru = min(self.usage_stats, key=self.usage_stats.get)
                del self.transformation_cache[lru]
                del self.usage_stats[lru]
            self.transformation_cache[key] = entry
            self.usage_stats[key] = 0

        lead = x.shape[:-1]
        m = math.prod(lead) if lead else 1          # pure-Python shape math
        x2d = x.reshape(m, d_in)
        out2d = smart_projection_pallas(x2d, entry["padded"], entry["dims"],
                                        matmul_dtype=self.matmul_dtype)
        return out2d.reshape(*lead, target_dim)


# ---------------------------------------------------------------------------
# Pure-JAX reference for correctness check (same bf16-operand matmul semantics)
# ---------------------------------------------------------------------------
def _reference(x2d, true_params, matmul_dtype=jnp.bfloat16):
    w1, b1, g1, be1, w2, b2, g2, be2 = true_params
    eps = 1e-5
    h = jnp.dot(x2d.astype(matmul_dtype), w1.astype(matmul_dtype),
                preferred_element_type=jnp.float32) + b1
    mu = h.mean(-1, keepdims=True)
    var = ((h - mu) ** 2).mean(-1, keepdims=True)
    h = (h - mu) * lax.rsqrt(var + eps) * g1 + be1
    h = 0.5 * h * (1.0 + lax.erf(h / jnp.sqrt(2.0)))
    y = jnp.dot(h.astype(matmul_dtype), w2.astype(matmul_dtype),
                preferred_element_type=jnp.float32) + b2
    mu2 = y.mean(-1, keepdims=True)
    var2 = ((y - mu2) ** 2).mean(-1, keepdims=True)
    return (y - mu2) * lax.rsqrt(var2 + eps) * g2 + be2


if __name__ == "__main__":
    # ---- Test 1: adapter path (shrink 32 -> 16, hidden = 32) ---------------
    batch, seq, d_in = 2, 8, 32
    target_dim = 16

    key = jax.random.PRNGKey(0)
    x = jax.random.normal(key, (batch, seq, d_in), jnp.float32)

    adapter = IntelligentDimensionAdapterPallas(seed=0)
    adapter.register_component("policy_head", expected_input_range=(8, 24),
                               preferred_dim=target_dim)

    out = adapter.adapt_tensor(x, "policy_head", source_component="encoder")
    out = jax.block_until_ready(out)
    assert out.shape == (batch, seq, target_dim), out.shape

    entry = adapter.transformation_cache[
        f"encoder_policy_head_{d_in}_{target_dim}"]
    ref = _reference(x.reshape(-1, d_in), entry["true"]).reshape(
        batch, seq, target_dim)
    err = float(jnp.max(jnp.abs(out - ref)))
    assert jnp.allclose(out, ref, atol=2e-3, rtol=2e-3), err

    # ---- Test 2: exercise the K-tiled contraction path (d_in_p=256, tk=128) -
    d_in2, d_out2, rows = 256, 64, 24
    entry2 = adapter._make_smart_projection_params(d_in2, d_out2)
    x2 = jax.random.normal(jax.random.PRNGKey(1), (rows, d_in2), jnp.float32)
    out2 = smart_projection_pallas(x2, entry2["padded"], entry2["dims"],
                                   max_tile_k=128)
    out2 = jax.block_until_ready(out2)
    assert out2.shape == (rows, d_out2), out2.shape
    ref2 = _reference(x2, entry2["true"])
    err2 = float(jnp.max(jnp.abs(out2 - ref2)))
    assert jnp.allclose(out2, ref2, atol=2e-3, rtol=2e-3), err2

    print("KERNEL_OK")
</pallas_src>

<mosaic_0001>
module attributes {stable_mosaic.version = 11 : i64} {
  func.func @_smart_projection_kernel(%arg0: i32, %arg1: i32, %arg2: memref<16x128xbf16, #tpu.memory_space<vmem>>, %arg3: memref<128x128xbf16, #tpu.memory_space<vmem>>, %arg4: memref<1x128xf32, #tpu.memory_space<vmem>>, %arg5: memref<1x128xf32, #tpu.memory_space<vmem>>, %arg6: memref<1x128xf32, #tpu.memory_space<vmem>>, %arg7: memref<1x128xf32, #tpu.memory_space<vmem>>, %arg8: memref<128x128xbf16, #tpu.memory_space<vmem>>, %arg9: memref<1x128xf32, #tpu.memory_space<vmem>>, %arg10: memref<1x128xf32, #tpu.memory_space<vmem>>, %arg11: memref<1x128xf32, #tpu.memory_space<vmem>>, %arg12: memref<1x128xf32, #tpu.memory_space<vmem>>, %arg13: memref<16x128xf32, #tpu.memory_space<vmem>>) attributes {dimension_semantics = [#tpu.dimension_semantics<parallel>, #tpu.dimension_semantics<arbitrary>], iteration_bounds = array<i64: 1, 1>, scalar_prefetch = 0 : i64, scratch_operands = 0 : i64, tpu.core_type = #tpu.core_type<tc>, window_params = [{transform_indices = @transform_0, window_bounds = array<i64: 16, 128>}, {pipeline_mode = #tpu.pipeline_mode<synchronous>, transform_indices = @transform_1, window_bounds = array<i64: 128, 128>}, {pipeline_mode = #tpu.pipeline_mode<synchronous>, transform_indices = @transform_2, window_bounds = array<i64: 1, 128>}, {pipeline_mode = #tpu.pipeline_mode<synchronous>, transform_indices = @transform_3, window_bounds = array<i64: 1, 128>}, {pipeline_mode = #tpu.pipeline_mode<synchronous>, transform_indices = @transform_4, window_bounds = array<i64: 1, 128>}, {pipeline_mode = #tpu.pipeline_mode<synchronous>, transform_indices = @transform_5, window_bounds = array<i64: 1, 128>}, {pipeline_mode = #tpu.pipeline_mode<synchronous>, transform_indices = @transform_6, window_bounds = array<i64: 128, 128>}, {pipeline_mode = #tpu.pipeline_mode<synchronous>, transform_indices = @transform_7, window_bounds = array<i64: 1, 128>}, {pipeline_mode = #tpu.pipeline_mode<synchronous>, transform_indices = @transform_8, window_bounds = array<i64: 1, 128>}, {pipeline_mode = #tpu.pipeline_mode<synchronous>, transform_indices = @transform_9, window_bounds = array<i64: 1, 128>}, {pipeline_mode = #tpu.pipeline_mode<synchronous>, transform_indices = @transform_10, window_bounds = array<i64: 1, 128>}, {transform_indices = @transform_11, window_bounds = array<i64: 16, 128>}]} {
    %c0 = arith.constant 0 : index
    %c0_0 = arith.constant 0 : index
    %0 = vector.load %arg2[%c0, %c0_0] : memref<16x128xbf16, #tpu.memory_space<vmem>>, vector<16x128xbf16>
    %c0_1 = arith.constant 0 : index
    %c0_2 = arith.constant 0 : index
    %1 = vector.load %arg3[%c0_1, %c0_2] : memref<128x128xbf16, #tpu.memory_space<vmem>>, vector<128x128xbf16>
    %cst = arith.constant dense<0.000000e+00> : vector<16x128xf32>
    %2 = tpu.matmul %0, %1, %cst {dimension_numbers = #tpu.dot_dimension_numbers<[1], [0], [0], [1], [0, 0, 1, 1], [], []>} : vector<16x128xbf16>, vector<128x128xbf16>, vector<16x128xf32> -> vector<16x128xf32>
    %c0_3 = arith.constant 0 : index
    %c0_4 = arith.constant 0 : index
    %3 = vector.load %arg4[%c0_3, %c0_4] : memref<1x128xf32, #tpu.memory_space<vmem>>, vector<1x128xf32>
    %4 = vector.broadcast %3 : vector<1x128xf32> to vector<16x128xf32>
    %5 = arith.addf %2, %4 : vector<16x128xf32>
    %c0_5 = arith.constant 0 : index
    %c0_6 = arith.constant 0 : index
    %6 = vector.load %arg7[%c0_5, %c0_6] : memref<1x128xf32, #tpu.memory_space<vmem>>, vector<1x128xf32>
    %c0_7 = arith.constant 0 : index
    %c0_8 = arith.constant 0 : index
    %7 = vector.load %arg5[%c0_7, %c0_8] : memref<1x128xf32, #tpu.memory_space<vmem>>, vector<1x128xf32>
    %c0_9 = arith.constant 0 : index
    %c0_10 = arith.constant 0 : index
    %8 = vector.load %arg6[%c0_9, %c0_10] : memref<1x128xf32, #tpu.memory_space<vmem>>, vector<1x128xf32>
    %cst_11 = arith.constant dense<0.000000e+00> : vector<16xf32>
    %9 = vector.multi_reduction <add>, %5, %cst_11 [1] : vector<16x128xf32> to vector<16xf32>
    %10 = vector.shape_cast %9 : vector<16xf32> to vector<16x1xf32>
    %cst_12 = arith.constant 3.125000e-02 : f32
    %11 = vector.broadcast %cst_12 : f32 to vector<16x1xf32>
    %12 = arith.mulf %10, %11 : vector<16x1xf32>
    %13 = vector.broadcast %12 : vector<16x1xf32> to vector<16x128xf32>
    %14 = arith.subf %5, %13 : vector<16x128xf32>
    %15 = vector.broadcast %6 : vector<1x128xf32> to vector<16x128xf32>
    %16 = arith.mulf %14, %15 : vector<16x128xf32>
    %17 = arith.mulf %16, %16 : vector<16x128xf32>
    %cst_13 = arith.constant dense<0.000000e+00> : vector<16xf32>
    %18 = vector.multi_reduction <add>, %17, %cst_13 [1] : vector<16x128xf32> to vector<16xf32>
    %19 = vector.shape_cast %18 : vector<16xf32> to vector<16x1xf32>
    %cst_14 = arith.constant 3.125000e-02 : f32
    %20 = vector.broadcast %cst_14 : f32 to vector<16x1xf32>
    %21 = arith.mulf %19, %20 : vector<16x1xf32>
    %cst_15 = arith.constant 9.99999974E-6 : f32
    %22 = vector.broadcast %cst_15 : f32 to vector<16x1xf32>
    %23 = arith.addf %21, %22 : vector<16x1xf32>
    %24 = math.rsqrt %23 : vector<16x1xf32>
    %25 = vector.broadcast %24 : vector<16x1xf32> to vector<16x128xf32>
    %26 = arith.mulf %16, %25 : vector<16x128xf32>
    %27 = vector.broadcast %7 : vector<1x128xf32> to vector<16x128xf32>
    %28 = arith.mulf %26, %27 : vector<16x128xf32>
    %29 = vector.broadcast %8 : vector<1x128xf32> to vector<16x128xf32>
    %30 = arith.addf %28, %29 : vector<16x128xf32>
    %cst_16 = arith.constant 5.000000e-01 : f32
    %31 = vector.broadcast %cst_16 : f32 to vector<16x128xf32>
    %32 = arith.mulf %31, %30 : vector<16x128xf32>
    %cst_17 = arith.constant 0.707106769 : f32
    %33 = vector.broadcast %cst_17 : f32 to vector<16x128xf32>
    %34 = arith.mulf %30, %33 : vector<16x128xf32>
    %35 = math.erf %34 : vector<16x128xf32>
    %cst_18 = arith.constant 1.000000e+00 : f32
    %36 = vector.broadcast %cst_18 : f32 to vector<16x128xf32>
    %37 = arith.addf %36, %35 : vector<16x128xf32>
    %38 = arith.mulf %32, %37 : vector<16x128xf32>
    %39 = arith.truncf %38 : vector<16x128xf32> to vector<16x128xbf16>
    %c0_19 = arith.constant 0 : index
    %c0_20 = arith.constant 0 : index
    %40 = vector.load %arg8[%c0_19, %c0_20] : memref<128x128xbf16, #tpu.memory_space<vmem>>, vector<128x128xbf16>
    %cst_21 = arith.constant dense<0.000000e+00> : vector<16x128xf32>
    %41 = tpu.matmul %39, %40, %cst_21 {dimension_numbers = #tpu.dot_dimension_numbers<[1], [0], [0], [1], [0, 0, 1, 1], [], []>} : vector<16x128xbf16>, vector<128x128xbf16>, vector<16x128xf32> -> vector<16x128xf32>
    %c0_22 = arith.constant 0 : index
    %c0_23 = arith.constant 0 : index
    %42 = vector.load %arg9[%c0_22, %c0_23] : memref<1x128xf32, #tpu.memory_space<vmem>>, vector<1x128xf32>
    %43 = vector.broadcast %42 : vector<1x128xf32> to vector<16x128xf32>
    %44 = arith.addf %41, %43 : vector<16x128xf32>
    %c0_24 = arith.constant 0 : index
    %c0_25 = arith.constant 0 : index
    %45 = vector.load %arg12[%c0_24, %c0_25] : memref<1x128xf32, #tpu.memory_space<vmem>>, vector<1x128xf32>
    %c0_26 = arith.constant 0 : index
    %c0_27 = arith.constant 0 : index
    %46 = vector.load %arg10[%c0_26, %c0_27] : memref<1x128xf32, #tpu.memory_space<vmem>>, vector<1x128xf32>
    %c0_28 = arith.constant 0 : index
    %c0_29 = arith.constant 0 : index
    %47 = vector.load %arg11[%c0_28, %c0_29] : memref<1x128xf32, #tpu.memory_space<vmem>>, vector<1x128xf32>
    %cst_30 = arith.constant dense<0.000000e+00> : vector<16xf32>
    %48 = vector.multi_reduction <add>, %44, %cst_30 [1] : vector<16x128xf32> to vector<16xf32>
    %49 = vector.shape_cast %48 : vector<16xf32> to vector<16x1xf32>
    %cst_31 = arith.constant 6.250000e-02 : f32
    %50 = vector.broadcast %cst_31 : f32 to vector<16x1xf32>
    %51 = arith.mulf %49, %50 : vector<16x1xf32>
    %52 = vector.broadcast %51 : vector<16x1xf32> to vector<16x128xf32>
    %53 = arith.subf %44, %52 : vector<16x128xf32>
    %54 = vector.broadcast %45 : vector<1x128xf32> to vector<16x128xf32>
    %55 = arith.mulf %53, %54 : vector<16x128xf32>
    %56 = arith.mulf %55, %55 : vector<16x128xf32>
    %cst_32 = arith.constant dense<0.000000e+00> : vector<16xf32>
    %57 = vector.multi_reduction <add>, %56, %cst_32 [1] : vector<16x128xf32> to vector<16xf32>
    %58 = vector.shape_cast %57 : vector<16xf32> to vector<16x1xf32>
    %cst_33 = arith.constant 6.250000e-02 : f32
    %59 = vector.broadcast %cst_33 : f32 to vector<16x1xf32>
    %60 = arith.mulf %58, %59 : vector<16x1xf32>
    %cst_34 = arith.constant 9.99999974E-6 : f32
    %61 = vector.broadcast %cst_34 : f32 to vector<16x1xf32>
    %62 = arith.addf %60, %61 : vector<16x1xf32>
    %63 = math.rsqrt %62 : vector<16x1xf32>
    %64 = vector.broadcast %63 : vector<16x1xf32> to vector<16x128xf32>
    %65 = arith.mulf %55, %64 : vector<16x128xf32>
    %66 = vector.broadcast %46 : vector<1x128xf32> to vector<16x128xf32>
    %67 = arith.mulf %65, %66 : vector<16x128xf32>
    %68 = vector.broadcast %47 : vector<1x128xf32> to vector<16x128xf32>
    %69 = arith.addf %67, %68 : vector<16x128xf32>
    %c0_35 = arith.constant 0 : index
    %c0_36 = arith.constant 0 : index
    %70 = vector.load %arg13[%c0_35, %c0_36] : memref<16x128xf32, #tpu.memory_space<vmem>>, vector<16x128xf32>
    tpu.vector_store %arg13[%c0_35, %c0_36], %69 {strides = array<i32>} : memref<16x128xf32, #tpu.memory_space<vmem>>, vector<16x128xf32>,
    return
  }
  func.func @transform_0(%arg0: i32, %arg1: i32) -> (i32, i32) {
    %c0_i32 = arith.constant 0 : i32
    return %arg0, %arg1 : i32, i32
  }
  func.func @transform_1(%arg0: i32, %arg1: i32) -> (i32, i32) {
    %c0_i32 = arith.constant 0 : i32
    %c0_i32_0 = arith.constant 0 : i32
    return %arg1, %c0_i32 : i32, i32
  }
  func.func @transform_2(%arg0: i32, %arg1: i32) -> (i32, i32) {
    %c0_i32 = arith.constant 0 : i32
    %c0_i32_0 = arith.constant 0 : i32
    %c0_i32_1 = arith.constant 0 : i32
    return %c0_i32, %c0_i32_0 : i32, i32
  }
  func.func @transform_3(%arg0: i32, %arg1: i32) -> (i32, i32) {
    %c0_i32 = arith.constant 0 : i32
    %c0_i32_0 = arith.constant 0 : i32
    %c0_i32_1 = arith.constant 0 : i32
    return %c0_i32, %c0_i32_0 : i32, i32
  }
  func.func @transform_4(%arg0: i32, %arg1: i32) -> (i32, i32) {
    %c0_i32 = arith.constant 0 : i32
    %c0_i32_0 = arith.constant 0 : i32
    %c0_i32_1 = arith.constant 0 : i32
    return %c0_i32, %c0_i32_0 : i32, i32
  }
  func.func @transform_5(%arg0: i32, %arg1: i32) -> (i32, i32) {
    %c0_i32 = arith.constant 0 : i32
    %c0_i32_0 = arith.constant 0 : i32
    %c0_i32_1 = arith.constant 0 : i32
    return %c0_i32, %c0_i32_0 : i32, i32
  }
  func.func @transform_6(%arg0: i32, %arg1: i32) -> (i32, i32) {
    %c0_i32 = arith.constant 0 : i32
    %c0_i32_0 = arith.constant 0 : i32
    %c0_i32_1 = arith.constant 0 : i32
    return %c0_i32, %c0_i32_0 : i32, i32
  }
  func.func @transform_7(%arg0: i32, %arg1: i32) -> (i32, i32) {
    %c0_i32 = arith.constant 0 : i32
    %c0_i32_0 = arith.constant 0 : i32
    %c0_i32_1 = arith.constant 0 : i32
    return %c0_i32, %c0_i32_0 : i32, i32
  }
  func.func @transform_8(%arg0: i32, %arg1: i32) -> (i32, i32) {
    %c0_i32 = arith.constant 0 : i32
    %c0_i32_0 = arith.constant 0 : i32
    %c0_i32_1 = arith.constant 0 : i32
    return %c0_i32, %c0_i32_0 : i32, i32
  }
  func.func @transform_9(%arg0: i32, %arg1: i32) -> (i32, i32) {
    %c0_i32 = arith.constant 0 : i32
    %c0_i32_0 = arith.constant 0 : i32
    %c0_i32_1 = arith.constant 0 : i32
    return %c0_i32, %c0_i32_0 : i32, i32
  }
  func.func @transform_10(%arg0: i32, %arg1: i32) -> (i32, i32) {
    %c0_i32 = arith.constant 0 : i32
    %c0_i32_0 = arith.constant 0 : i32
    %c0_i32_1 = arith.constant 0 : i32
    return %c0_i32, %c0_i32_0 : i32, i32
  }
  func.func @transform_11(%arg0: i32, %arg1: i32) -> (i32, i32) {
    %c0_i32 = arith.constant 0 : i32
    %c0_i32_0 = arith.constant 0 : i32
    return %arg0, %c0_i32 : i32, i32
  }
}

module attributes {stable_mosaic.version = 11 : i64} {
  func.func @_smart_projection_kernel(%arg0: i32, %arg1: i32, %arg2: memref<16x128xbf16, #tpu.memory_space<vmem>>, %arg3: memref<128x128xbf16, #tpu.memory_space<vmem>>, %arg4: memref<1x128xf32, #tpu.memory_space<vmem>>, %arg5: memref<1x128xf32, #tpu.memory_space<vmem>>, %arg6: memref<1x128xf32, #tpu.memory_space<vmem>>, %arg7: memref<1x128xf32, #tpu.memory_space<vmem>>, %arg8: memref<128x128xbf16, #tpu.memory_space<vmem>>, %arg9: memref<1x128xf32, #tpu.memory_space<vmem>>, %arg10: memref<1x128xf32, #tpu.memory_space<vmem>>, %arg11: memref<1x128xf32, #tpu.memory_space<vmem>>, %arg12: memref<1x128xf32, #tpu.memory_space<vmem>>, %arg13: memref<16x128xf32, #tpu.memory_space<vmem>>) attributes {dimension_semantics = [#tpu.dimension_semantics<parallel>, #tpu.dimension_semantics<arbitrary>], iteration_bounds = array<i64: 1, 1>, scalar_prefetch = 0 : i64, scratch_operands = 0 : i64, tpu.core_type = #tpu.core_type<tc>, window_params = [{transform_indices = @transform_0, window_bounds = array<i64: 16, 128>}, {transform_indices = @transform_1, window_bounds = array<i64: 128, 128>}, {pipeline_mode = #tpu.pipeline_mode<synchronous>, transform_indices = @transform_2, window_bounds = array<i64: 1, 128>}, {pipeline_mode = #tpu.pipeline_mode<synchronous>, transform_indices = @transform_3, window_bounds = array<i64: 1, 128>}, {pipeline_mode = #tpu.pipeline_mode<synchronous>, transform_indices = @transform_4, window_bounds = array<i64: 1, 128>}, {pipeline_mode = #tpu.pipeline_mode<synchronous>, transform_indices = @transform_5, window_bounds = array<i64: 1, 128>}, {pipeline_mode = #tpu.pipeline_mode<synchronous>, transform_indices = @transform_6, window_bounds = array<i64: 128, 128>}, {pipeline_mode = #tpu.pipeline_mode<synchronous>, transform_indices = @transform_7, window_bounds = array<i64: 1, 128>}, {pipeline_mode = #tpu.pipeline_mode<synchronous>, transform_indices = @transform_8, window_bounds = array<i64: 1, 128>}, {pipeline_mode = #tpu.pipeline_mode<synchronous>, transform_indices = @transform_9, window_bounds = array<i64: 1, 128>}, {pipeline_mode = #tpu.pipeline_mode<synchronous>, transform_indices = @transform_10, window_bounds = array<i64: 1, 128>}, {transform_indices = @transform_11, window_bounds = array<i64: 16, 128>}]} {
    %c0 = arith.constant 0 : index
    %c0_0 = arith.constant 0 : index
    %0 = vector.load %arg2[%c0, %c0_0] : memref<16x128xbf16, #tpu.memory_space<vmem>>, vector<16x128xbf16>
    %c0_1 = arith.constant 0 : index
    %c0_2 = arith.constant 0 : index
    %1 = vector.load %arg3[%c0_1, %c0_2] : memref<128x128xbf16, #tpu.memory_space<vmem>>, vector<128x128xbf16>
    %cst = arith.constant dense<0.000000e+00> : vector<16x128xf32>
    %2 = tpu.matmul %0, %1, %cst {dimension_numbers = #tpu.dot_dimension_numbers<[1], [0], [0], [1], [0, 0, 1, 1], [], []>} : vector<16x128xbf16>, vector<128x128xbf16>, vector<16x128xf32> -> vector<16x128xf32>
    %c0_3 = arith.constant 0 : index
    %c0_4 = arith.constant 0 : index
    %3 = vector.load %arg4[%c0_3, %c0_4] : memref<1x128xf32, #tpu.memory_space<vmem>>, vector<1x128xf32>
    %4 = vector.broadcast %3 : vector<1x128xf32> to vector<16x128xf32>
    %5 = arith.addf %2, %4 : vector<16x128xf32>
    %c0_5 = arith.constant 0 : index
    %c0_6 = arith.constant 0 : index
    %6 = vector.load %arg7[%c0_5, %c0_6] : memref<1x128xf32, #tpu.memory_space<vmem>>, vector<1x128xf32>
    %c0_7 = arith.constant 0 : index
    %c0_8 = arith.constant 0 : index
    %7 = vector.load %arg5[%c0_7, %c0_8] : memref<1x128xf32, #tpu.memory_space<vmem>>, vector<1x128xf32>
    %c0_9 = arith.constant 0 : index
    %c0_10 = arith.constant 0 : index
    %8 = vector.load %arg6[%c0_9, %c0_10] : memref<1x128xf32, #tpu.memory_space<vmem>>, vector<1x128xf32>
    %cst_11 = arith.constant dense<0.000000e+00> : vector<16xf32>
    %9 = vector.multi_reduction <add>, %5, %cst_11 [1] : vector<16x128xf32> to vector<16xf32>
    %10 = vector.shape_cast %9 : vector<16xf32> to vector<16x1xf32>
    %cst_12 = arith.constant 3.125000e-02 : f32
    %11 = vector.broadcast %cst_12 : f32 to vector<16x1xf32>
    %12 = arith.mulf %10, %11 : vector<16x1xf32>
    %13 = vector.broadcast %12 : vector<16x1xf32> to vector<16x128xf32>
    %14 = arith.subf %5, %13 : vector<16x128xf32>
    %15 = vector.broadcast %6 : vector<1x128xf32> to vector<16x128xf32>
    %16 = arith.mulf %14, %15 : vector<16x128xf32>
    %17 = arith.mulf %16, %16 : vector<16x128xf32>
    %cst_13 = arith.constant dense<0.000000e+00> : vector<16xf32>
    %18 = vector.multi_reduction <add>, %17, %cst_13 [1] : vector<16x128xf32> to vector<16xf32>
    %19 = vector.shape_cast %18 : vector<16xf32> to vector<16x1xf32>
    %cst_14 = arith.constant 3.125000e-02 : f32
    %20 = vector.broadcast %cst_14 : f32 to vector<16x1xf32>
    %21 = arith.mulf %19, %20 : vector<16x1xf32>
    %cst_15 = arith.constant 9.99999974E-6 : f32
    %22 = vector.broadcast %cst_15 : f32 to vector<16x1xf32>
    %23 = arith.addf %21, %22 : vector<16x1xf32>
    %24 = math.rsqrt %23 : vector<16x1xf32>
    %25 = vector.broadcast %24 : vector<16x1xf32> to vector<16x128xf32>
    %26 = arith.mulf %16, %25 : vector<16x128xf32>
    %27 = vector.broadcast %7 : vector<1x128xf32> to vector<16x128xf32>
    %28 = arith.mulf %26, %27 : vector<16x128xf32>
    %29 = vector.broadcast %8 : vector<1x128xf32> to vector<16x128xf32>
    %30 = arith.addf %28, %29 : vector<16x128xf32>
    %cst_16 = arith.constant 5.000000e-01 : f32
    %31 = vector.broadcast %cst_16 : f32 to vector<16x128xf32>
    %32 = arith.mulf %31, %30 : vector<16x128xf32>
    %cst_17 = arith.constant 0.707106769 : f32
    %33 = vector.broadcast %cst_17 : f32 to vector<16x128xf32>
    %34 = arith.mulf %30, %33 : vector<16x128xf32>
    %35 = math.erf %34 : vector<16x128xf32>
    %cst_18 = arith.constant 1.000000e+00 : f32
    %36 = vector.broadcast %cst_18 : f32 to vector<16x128xf32>
    %37 = arith.addf %36, %35 : vector<16x128xf32>
    %38 = arith.mulf %32, %37 : vector<16x128xf32>
    %39 = arith.truncf %38 : vector<16x128xf32> to vector<16x128xbf16>
    %c0_19 = arith.constant 0 : index
    %c0_20 = arith.constant 0 : index
    %40 = vector.load %arg8[%c0_19, %c0_20] : memref<128x128xbf16, #tpu.memory_space<vmem>>, vector<128x128xbf16>
    %cst_21 = arith.constant dense<0.000000e+00> : vector<16x128xf32>
    %41 = tpu.matmul %39, %40, %cst_21 {dimension_numbers = #tpu.dot_dimension_numbers<[1], [0], [0], [1], [0, 0, 1, 1], [], []>} : vector<16x128xbf16>, vector<128x128xbf16>, vector<16x128xf32> -> vector<16x128xf32>
    %c0_22 = arith.constant 0 : index
    %c0_23 = arith.constant 0 : index
    %42 = vector.load %arg9[%c0_22, %c0_23] : memref<1x128xf32, #tpu.memory_space<vmem>>, vector<1x128xf32>
    %43 = vector.broadcast %42 : vector<1x128xf32> to vector<16x128xf32>
    %44 = arith.addf %41, %43 : vector<16x128xf32>
    %c0_24 = arith.constant 0 : index
    %c0_25 = arith.constant 0 : index
    %45 = vector.load %arg12[%c0_24, %c0_25] : memref<1x128xf32, #tpu.memory_space<vmem>>, vector<1x128xf32>
    %c0_26 = arith.constant 0 : index
    %c0_27 = arith.constant 0 : index
    %46 = vector.load %arg10[%c0_26, %c0_27] : memref<1x128xf32, #tpu.memory_space<vmem>>, vector<1x128xf32>
    %c0_28 = arith.constant 0 : index
    %c0_29 = arith.constant 0 : index
    %47 = vector.load %arg11[%c0_28, %c0_29] : memref<1x128xf32, #tpu.memory_space<vmem>>, vector<1x128xf32>
    %cst_30 = arith.constant dense<0.000000e+00> : vector<16xf32>
    %48 = vector.multi_reduction <add>, %44, %cst_30 [1] : vector<16x128xf32> to vector<16xf32>
    %49 = vector.shape_cast %48 : vector<16xf32> to vector<16x1xf32>
    %cst_31 = arith.constant 6.250000e-02 : f32
    %50 = vector.broadcast %cst_31 : f32 to vector<16x1xf32>
    %51 = arith.mulf %49, %50 : vector<16x1xf32>
    %52 = vector.broadcast %51 : vector<16x1xf32> to vector<16x128xf32>
    %53 = arith.subf %44, %52 : vector<16x128xf32>
    %54 = vector.broadcast %45 : vector<1x128xf32> to vector<16x128xf32>
    %55 = arith.mulf %53, %54 : vector<16x128xf32>
    %56 = arith.mulf %55, %55 : vector<16x128xf32>
    %cst_32 = arith.constant dense<0.000000e+00> : vector<16xf32>
    %57 = vector.multi_reduction <add>, %56, %cst_32 [1] : vector<16x128xf32> to vector<16xf32>
    %58 = vector.shape_cast %57 : vector<16xf32> to vector<16x1xf32>
    %cst_33 = arith.constant 6.250000e-02 : f32
    %59 = vector.broadcast %cst_33 : f32 to vector<16x1xf32>
    %60 = arith.mulf %58, %59 : vector<16x1xf32>
    %cst_34 = arith.constant 9.99999974E-6 : f32
    %61 = vector.broadcast %cst_34 : f32 to vector<16x1xf32>
    %62 = arith.addf %60, %61 : vector<16x1xf32>
    %63 = math.rsqrt %62 : vector<16x1xf32>
    %64 = vector.broadcast %63 : vector<16x1xf32> to vector<16x128xf32>
    %65 = arith.mulf %55, %64 : vector<16x128xf32>
    %66 = vector.broadcast %46 : vector<1x128xf32> to vector<16x128xf32>
    %67 = arith.mulf %65, %66 : vector<16x128xf32>
    %68 = vector.broadcast %47 : vector<1x128xf32> to vector<16x128xf32>
    %69 = arith.addf %67, %68 : vector<16x128xf32>
    %c0_35 = arith.constant 0 : index
    %c0_36 = arith.constant 0 : index
    %70 = vector.load %arg13[%c0_35, %c0_36] : memref<16x128xf32, #tpu.memory_space<vmem>>, vector<16x128xf32>
    tpu.vector_store %arg13[%c0_35, %c0_36], %69 {strides = array<i32>} : memref<16x128xf32, #tpu.memory_space<vmem>>, vector<16x128xf32>,
    return
  }
  func.func @transform_0(%arg0: i32, %arg1: i32) -> (i32, i32) {
    %c0_i32 = arith.constant 0 : i32
    return %arg0, %arg1 : i32, i32
  }
  func.func @transform_1(%arg0: i32, %arg1: i32) -> (i32, i32) {
    %c0_i32 = arith.constant 0 : i32
    %c0_i32_0 = arith.constant 0 : i32
    return %arg1, %c0_i32 : i32, i32
  }
  func.func @transform_2(%arg0: i32, %arg1: i32) -> (i32, i32) {
    %c0_i32 = arith.constant 0 : i32
    %c0_i32_0 = arith.constant 0 : i32
    %c0_i32_1 = arith.constant 0 : i32
    return %c0_i32, %c0_i32_0 : i32, i32
  }
  func.func @transform_3(%arg0: i32, %arg1: i32) -> (i32, i32) {
    %c0_i32 = arith.constant 0 : i32
    %c0_i32_0 = arith.constant 0 : i32
    %c0_i32_1 = arith.constant 0 : i32
    return %c0_i32, %c0_i32_0 : i32, i32
  }
  func.func @transform_4(%arg0: i32, %arg1: i32) -> (i32, i32) {
    %c0_i32 = arith.constant 0 : i32
    %c0_i32_0 = arith.constant 0 : i32
    %c0_i32_1 = arith.constant 0 : i32
    return %c0_i32, %c0_i32_0 : i32, i32
  }
  func.func @transform_5(%arg0: i32, %arg1: i32) -> (i32, i32) {
    %c0_i32 = arith.constant 0 : i32
    %c0_i32_0 = arith.constant 0 : i32
    %c0_i32_1 = arith.constant 0 : i32
    return %c0_i32, %c0_i32_0 : i32, i32
  }
  func.func @transform_6(%arg0: i32, %arg1: i32) -> (i32, i32) {
    %c0_i32 = arith.constant 0 : i32
    %c0_i32_0 = arith.constant 0 : i32
    %c0_i32_1 = arith.constant 0 : i32
    return %c0_i32, %c0_i32_0 : i32, i32
  }
  func.func @transform_7(%arg0: i32, %arg1: i32) -> (i32, i32) {
    %c0_i32 = arith.constant 0 : i32
    %c0_i32_0 = arith.constant 0 : i32
    %c0_i32_1 = arith.constant 0 : i32
    return %c0_i32, %c0_i32_0 : i32, i32
  }
  func.func @transform_8(%arg0: i32, %arg1: i32) -> (i32, i32) {
    %c0_i32 = arith.constant 0 : i32
    %c0_i32_0 = arith.constant 0 : i32
    %c0_i32_1 = arith.constant 0 : i32
    return %c0_i32, %c0_i32_0 : i32, i32
  }
  func.func @transform_9(%arg0: i32, %arg1: i32) -> (i32, i32) {
    %c0_i32 = arith.constant 0 : i32
    %c0_i32_0 = arith.constant 0 : i32
    %c0_i32_1 = arith.constant 0 : i32
    return %c0_i32, %c0_i32_0 : i32, i32
  }
  func.func @transform_10(%arg0: i32, %arg1: i32) -> (i32, i32) {
    %c0_i32 = arith.constant 0 : i32
    %c0_i32_0 = arith.constant 0 : i32
    %c0_i32_1 = arith.constant 0 : i32
    return %c0_i32, %c0_i32_0 : i32, i32
  }
  func.func @transform_11(%arg0: i32, %arg1: i32) -> (i32, i32) {
    %c0_i32 = arith.constant 0 : i32
    %c0_i32_0 = arith.constant 0 : i32
    return %arg0, %c0_i32 : i32, i32
  }
}

</mosaic_0001>

<bundles_post_ra>
// kernel: tpu_custom_call.1
= control target key start
LH: loop header
LB: loop body
LE: loop exit
PB: predicated region body
PF: predicated region fallthrough
CT: control target
= control target key end

     0   :  { %16 = vsyncpa [#allocation3], 0  ;;  %s834_s0 = inlined_call_operand.hbm [shape: bf16[16,128], index: 0, kind: input, shape index: {}]   ;;  %s835_s1 = inlined_call_operand.hbm [shape: bf16[128,128], index: 1, kind: input, shape index: {}]   ;;  %s836_s2 = inlined_call_operand.vmem [shape: f32[1,128], index: 2, kind: input, shape index: {}]   ;;  %s837_s3 = inlined_call_operand.vmem [shape: f32[1,128], index: 3, kind: input, shape index: {}]   ;;  %s838_s4 = inlined_call_operand.vmem [shape: f32[1,128], index: 4, kind: input, shape index: {}]   ;;  %s839_s5 = inlined_call_operand.vmem [shape: f32[1,128], index: 5, kind: input, shape index: {}]   ;;  %s840_s6 = inlined_call_operand.hbm [shape: bf16[128,128], index: 6, kind: input, shape index: {}]   ;;  %s841_s7 = inlined_call_operand.vmem [shape: f32[1,128], index: 7, kind: input, shape index: {}]   ;;  %s842_s8 = inlined_call_operand.vmem [shape: f32[1,128], index: 8, kind: input, shape index: {}]   ;;  %s843_s9 = inlined_call_operand.vmem [shape: f32[1,128], index: 9, kind: input, shape index: {}]   ;;  %s844_s10 = inlined_call_operand.vmem [shape: f32[1,128], index: 10, kind: input, shape index: {}]   ;;  %s845_s11 = inlined_call_operand.hbm [shape: f32[16,128], index: 11, kind: output, shape index: {}]  }
   0x1   :  { %17 = vsyncpa [#allocation6], 0 }
   0x2   :  { %18 = vsyncpa [#allocation4], 0  ;;  %s658_s17 = smov [#allocation5]   ;;  %s659_s19 = smov [#allocation2]  }
   0x3   :  { %s36_s18 = sshll.u32 %s658_s17, 4  ;;  %s24_s20 = sshll.u32 %s659_s19, 4  ;;  %s37_s18 = int_to_ptr.vmem [resolvable:$true] %s36_s18  ;;  %s728_s20 = int_to_ptr.vmem [resolvable:$true] %s24_s20 }
   0x4   :  { %s564_s23 = scalar_lea.hbm %s835_s1, 1024 }
   0x5   :  { %p565_p0 = scmp.ne.s32.totalorder %s835_s1, %s564_s23  ;;  %p568_p1 = scmp.lt.u32.totalorder %s564_s23, %s835_s1 }
   0x7   :  { %p570_p2 = pnand %p568_p1, %p565_p0 }
   0x9   :  { %573 = shalt.err (!%p570_p2)
}
   0xa   :  { %s574_s28 = scalar_lea.vmem %s37_s18, 1024  ;;  %p579_p4 = scmp.lt.s32.totalorder %s37_s18, %s37_s18 }
   0xb   :  { %p575_p3 = scmp.ne.s32.totalorder %s37_s18, %s574_s28  ;;  %p580_p5 = scmp.lt.s32.totalorder %s574_s28, %s574_s28 }
   0xd   :  { %p581_p6 = por %p580_p5, %p579_p4 }
   0xf   :  { %p582_p7 = pnand %p581_p6, %p575_p3 }
  0x11   :  { %585 = shalt.err (!%p582_p7)
}
  0x12   :  { %s660_s29 = smov 64   ;;  %s661_s30 = smov 4  }
  0x13   :  { %42 = dma.hbm_to_vmem [thread:$0]  %s835_s1, 1024, %s37_s18, [#allocation6], %s660_s29, %s660_s29, %s661_s30  }
  0x14   :  { %s586_s16 = scalar_lea.hbm %s834_s0, 128 }
  0x15   :  { %p587_p8 = scmp.ne.s32.totalorder %s834_s0, %s586_s16  ;;  %p590_p9 = scmp.lt.u32.totalorder %s586_s16, %s834_s0 }
  0x17   :  { %p592_p10 = pnand %p590_p9, %p587_p8 }
  0x19   :  { %595 = shalt.err (!%p592_p10)
}
  0x1a   :  { %s596_s23 = scalar_lea.vmem %s728_s20, 128  ;;  %p601_p12 = scmp.lt.s32.totalorder %s728_s20, %s728_s20 }
  0x1b   :  { %p597_p11 = scmp.ne.s32.totalorder %s728_s20, %s596_s23  ;;  %p602_p13 = scmp.lt.s32.totalorder %s596_s23, %s596_s23 }
  0x1d   :  { %p603_p0 = por %p602_p13, %p601_p12 }
  0x1f   :  { %p604_p1 = pnand %p603_p0, %p597_p11 }
  0x21   :  { %607 = shalt.err (!%p604_p1)
}
  0x22   :  { %30 = dma.hbm_to_vmem [thread:$0]  %s834_s0, 128, %s728_s20, [#allocation3], %s660_s29, %s660_s29, %s661_s30  }
  0x23   :  { %s662_s24 = smov [#allocation7]   ;;  %s608_s28 = scalar_lea.hbm %s840_s6, 1024 }
  0x24   :  { %s56_s25 = sshll.u32 %s662_s24, 4  ;;  %p609_p2 = scmp.ne.s32.totalorder %s840_s6, %s608_s28  ;;  %s57_s25 = int_to_ptr.vmem [resolvable:$true] %s56_s25 }
  0x25   :  { %p612_p3 = scmp.lt.u32.totalorder %s608_s28, %s840_s6 }
  0x27   :  { %p614_p4 = pnand %p612_p3, %p609_p2 }
  0x29   :  { %617 = shalt.err (!%p614_p4)
}
  0x2a   :  { %s618_s16 = scalar_lea.vmem %s57_s25, 1024  ;;  %p623_p6 = scmp.lt.s32.totalorder %s57_s25, %s57_s25 }
  0x2b   :  { %p619_p5 = scmp.ne.s32.totalorder %s57_s25, %s618_s16  ;;  %p624_p7 = scmp.lt.s32.totalorder %s618_s16, %s618_s16 }
  0x2d   :  { %p625_p8 = por %p624_p7, %p623_p6 }
  0x2f   :  { %p626_p9 = pnand %p625_p8, %p619_p5 }
  0x31   :  { %629 = shalt.err (!%p626_p9)
}
  0x32   :  { %62 = dma.hbm_to_vmem [thread:$0]  %s840_s6, 1024, %s57_s25, [#allocation6], %s660_s29, %s660_s29, %s661_s30  }
  0x33   :  { %652 = dma.done.wait [#allocation3], 128  }
  0x34   :  { %653 = vsyncadd [#allocation3], 4294967168 }
  0x35   :  { %654 = dma.done.wait [#allocation6], 2048  }
  0x36   :  { %655 = vsyncadd [#allocation6], 4294965248  ;;  %v663_v0 = vmov 0.0   ;;  %vm664_vm0 = vmmov 0   ;;  %v535_v1 = vld [vmem:[#allocation5] sm:$0xff]   ;;  %v536_v2 = vld [vmem:[#allocation5 + $0x8] sm:$0xff]  }
  0x37   :  { %485 = vmatprep.subr.bf16.mxu0 %v663_v0  ;;  %501 = vmatprep.mubr.msk.bf16.mxu0 %vm664_vm0, %v663_v0  ;;  %v537_v3 = vld [vmem:[#allocation5 + $0x10] sm:$0xff]   ;;  %v538_v4 = vld [vmem:[#allocation5 + $0x18] sm:$0xff]   ;;  %v539_v5 = vld [vmem:[#allocation5 + $0x20] sm:$0xff]   ;;  %s665_s24 = smov [#allocation8]  }
  0x38   :  { %505 = vmatprep.subr.bf16.mxu1 %v663_v0  ;;  %521 = vmatprep.mubr.msk.bf16.mxu1 %vm664_vm0, %v663_v0  ;;  %v540_v6 = vld [vmem:[#allocation5 + $0x28] sm:$0xff]   ;;  %v541_v7 = vld [vmem:[#allocation5 + $0x30] sm:$0xff]   ;;  %v542_v8 = vld [vmem:[#allocation5 + $0x38] sm:$0xff]   ;;  %s429_s25 = sshll.u32 %s665_s24, 4  ;;  %s430_s25 = int_to_ptr.vmem [resolvable:$true] %s429_s25 }
  0x39   :  { %486 = vmatpush3.bf16.msra.mxu0 %v535_v1  ;;  %v543_v9 = vld [vmem:[#allocation2] sm:$0xff]   ;;  %v544_v28 = vld [vmem:[#allocation7] sm:$0xff]   ;;  %v545_v29 = vld [vmem:[#allocation7 + $0x8] sm:$0xff]   ;;  %s630_s26 = scalar_lea.vmem %s430_s25, 256  ;;  %p635_p11 = scmp.lt.s32.totalorder %s430_s25, %s430_s25 }
  0x3a   :  { %487 = vmatprep.subr.bf16.mxu0 %v663_v0  ;;  %v442_v10 = vld [vmem:[%s836_s2] ss:$0 sm:$0xff]  ;;  %506 = vmatpush3.bf16.msra.mxu1 %v544_v28  ;;  %v546_v30 = vld [vmem:[#allocation7 + $0x10] sm:$0xff]   ;;  %v548_v32 = vld [vmem:[#allocation7 + $0x20] sm:$0xff]   ;;  %p631_p10 = scmp.ne.s32.totalorder %s430_s25, %s630_s26  ;;  %p636_p12 = scmp.lt.s32.totalorder %s630_s26, %s630_s26 }
  0x3b   :  { %v452_v19 = vld [vmem:[%s839_s5] ss:$0 sm:$0xff]  ;;  %507 = vmatprep.subr.bf16.mxu1 %v663_v0  ;;  %v549_v33 = vld [vmem:[#allocation7 + $0x28] sm:$0xff]   ;;  %v550_v34 = vld [vmem:[#allocation7 + $0x30] sm:$0xff]  }
  0x3c   :  { %v547_v31 = vld [vmem:[#allocation7 + $0x18] sm:$0xff]   ;;  %p637_p13 = por %p636_p12, %p635_p11 }
  0x3d   :  { %488 = vmatpush3.bf16.msra.mxu0 %v536_v2  ;;  %v551_v35 = vld [vmem:[#allocation7 + $0x38] sm:$0xff]  }
  0x3e   :  { %489 = vmatprep.subr.bf16.mxu0 %v663_v0  ;;  %508 = vmatpush3.bf16.msra.mxu1 %v545_v29  ;;  %v453_v43 = vld [vmem:[%s837_s3] ss:$0 sm:$0xff]  ;;  %p638_p0 = pnand %p637_p13, %p631_p10 }
  0x3f   :  { %509 = vmatprep.subr.bf16.mxu1 %v663_v0  ;;  %v454_v45 = vld [vmem:[%s838_s4] ss:$0 sm:$0xff] }
  0x40   :  { %v455_v63 = vld [vmem:[%s841_s7] ss:$0 sm:$0xff] }
  0x41   :  { %490 = vmatpush3.bf16.msra.mxu0 %v537_v3 }
  0x42   :  { %491 = vmatprep.subr.bf16.mxu0 %v663_v0  ;;  %510 = vmatpush3.bf16.msra.mxu1 %v546_v30 }
  0x43   :  { %511 = vmatprep.subr.bf16.mxu1 %v663_v0 }
  0x45   :  { %492 = vmatpush3.bf16.msra.mxu0 %v538_v4 }
  0x46   :  { %493 = vmatprep.subr.bf16.mxu0 %v663_v0  ;;  %512 = vmatpush3.bf16.msra.mxu1 %v547_v31 }
  0x47   :  { %513 = vmatprep.subr.bf16.mxu1 %v663_v0 }
  0x49   :  { %494 = vmatpush3.bf16.msra.mxu0 %v539_v5 }
  0x4a   :  { %495 = vmatprep.subr.bf16.mxu0 %v663_v0  ;;  %514 = vmatpush3.bf16.msra.mxu1 %v548_v32 }
  0x4b   :  { %515 = vmatprep.subr.bf16.mxu1 %v663_v0 }
  0x4d   :  { %496 = vmatpush3.bf16.msra.mxu0 %v540_v6 }
  0x4e   :  { %497 = vmatprep.subr.bf16.mxu0 %v663_v0  ;;  %516 = vmatpush3.bf16.msra.mxu1 %v549_v33 }
  0x4f   :  { %517 = vmatprep.subr.bf16.mxu1 %v663_v0 }
  0x51   :  { %498 = vmatpush3.bf16.msra.mxu0 %v541_v7 }
  0x52   :  { %499 = vmatprep.subr.bf16.mxu0 %v663_v0  ;;  %518 = vmatpush3.bf16.msra.mxu1 %v550_v34 }
  0x53   :  { %519 = vmatprep.subr.bf16.mxu1 %v663_v0 }
  0x55   :  { %500 = vmatpush3.bf16.msra.mxu0 %v542_v8 }
  0x56   :  { %520 = vmatpush3.bf16.msra.mxu1 %v551_v35 }
  0x58   :  { %502 = vmatmul.mubr.bf16.vlgmr.msra.gmra.mrb[0].mxu0 %v543_v9  ;;  %v464_v9 = vld [vmem:[%s844_s10] ss:$0 sm:$0xff] }
 0x12b   :  { %v194_v11 = vpop.f32.mrb[0].mxu0 }
 0x12c   :  { %v195_v12 = vadd.f32 %v442_v10, %v194_v11  ;;  %v503_v13 = vpop.f32.mrb[1].mxu0 }
 0x12d   :  { %v197_v14 = vpop.f32.mrb[2].mxu0 }
 0x12e   :  { %204 = vadd.xlane.f32.xlu0 %v195_v12  ;;  %v504_v15 = vpop.f32.mrb[3].mxu0  ;;  %v198_v16 = vadd.f32 %v442_v10, %v197_v14 }
 0x132   :  { %206 = vadd.xlane.f32.xlu0 %v198_v16 }
 0x1bb   :  { %v205_v17 = vpop.xlane.xlu0 %204 }
 0x1bc   :  { %v208_v18 = vmul.f32 0.03125, %v205_v17 }
 0x1be   :  { %v210_v20 = vsub.f32 %v195_v12, %v208_v18 }
 0x1bf   :  { %v207_v21 = vpop.xlane.xlu0 %206 }
 0x1c0   :  { %v209_v22 = vmul.f32 0.03125, %v207_v21  ;;  %v218_v23 = vmul.f32 %v452_v19, %v210_v20 }
 0x1c2   :  { %v211_v24 = vsub.f32 %v198_v16, %v209_v22  ;;  %v220_v25 = vmul.f32 %v218_v23, %v218_v23 }
 0x1c4   :  { %222 = vadd.xlane.f32.xlu1 %v220_v25  ;;  %v219_v26 = vmul.f32 %v452_v19, %v211_v24  ;;  %v465_v24 = vld [vmem:[%s842_s8] ss:$0 sm:$0xff] }
 0x1c6   :  { %v221_v27 = vmul.f32 %v219_v26, %v219_v26 }
 0x1c8   :  { %224 = vadd.xlane.f32.xlu1 %v221_v27  ;;  %v466_v27 = vld [vmem:[%s843_s9] ss:$0 sm:$0xff] }
 0x251   :  { %v223_v36 = vpop.xlane.xlu1 %222 }
 0x252   :  { %v226_v37 = vmul.f32 0.03125, %v223_v36 }
 0x254   :  { %v228_v38 = vadd.f32 1e-05, %v226_v37 }
 0x255   :  { %v225_v39 = vpop.xlane.xlu1 %224 }
 0x256   :  { %552 = vrsqrt.f32 %v228_v38  ;;  %v227_v40 = vmul.f32 0.03125, %v225_v39 }
 0x258   :  { %v229_v41 = vadd.f32 1e-05, %v227_v40 }
 0x25a   :  { %554 = vrsqrt.f32 %v229_v41 }
 0x260   :  { %v553_v42 = vpop.eup %552 }
 0x261   :  { %v232_v44 = vmul.f32 %v553_v42, %v218_v23 }
 0x263   :  { %v240_v46 = vmul.f32 %v453_v43, %v232_v44 }
 0x264   :  { %v555_v47 = vpop.eup %554 }
 0x265   :  { %v233_v48 = vmul.f32 %v555_v47, %v219_v26  ;;  %v248_v49 = vadd.f32 %v454_v45, %v240_v46 }
 0x267   :  { %v241_v50 = vmul.f32 %v453_v43, %v233_v48  ;;  %v252_v51 = vmul.f32 0.70710677, %v248_v49  ;;  %v250_v57 = vmul.f32 0.5, %v248_v49 }
 0x269   :  { %v249_v52 = vadd.f32 %v454_v45, %v241_v50  ;;  %556 = verf.f32 %v252_v51 }
 0x26b   :  { %v253_v53 = vmul.f32 0.70710677, %v249_v52  ;;  %v251_v58 = vmul.f32 0.5, %v249_v52 }
 0x26d   :  { %558 = verf.f32 %v253_v53 }
 0x273   :  { %v557_v54 = vpop.eup %556 }
 0x274   :  { %v256_v55 = vadd.f32 1.0, %v557_v54 }
 0x276   :  { %v258_v60 = vmul.f32 %v256_v55, %v250_v57 }
 0x277   :  { %v559_v56 = vpop.eup %558 }
 0x278   :  { %v257_v59 = vadd.f32 1.0, %v559_v56 }
 0x27a   :  { %v259_v61 = vmul.f32 %v257_v59, %v251_v58 }
 0x27c   :  { %v260_v62 = vpack.c.bf16 %v259_v61, %v258_v60 }
 0x27e   :  { %522 = vmatmul.mubr.bf16.vlgmr.msra.gmra.mrb[0].mxu1 %v260_v62 }
 0x351   :  { %v366_v0 = vpop.f32.mrb[0].mxu1 }
 0x352   :  { %v367_v1 = vadd.f32 %v455_v63, %v366_v0  ;;  %v523_v2 = vpop.f32.mrb[1].mxu1 }
 0x353   :  { %v369_v3 = vpop.f32.mrb[2].mxu1 }
 0x354   :  { %v370_v4 = vadd.f32 %v455_v63, %v369_v3  ;;  %376 = vadd.xlane.f32.xlu0 %v367_v1  ;;  %v524_v5 = vpop.f32.mrb[3].mxu1 }
 0x356   :  { %378 = vadd.xlane.f32.xlu1 %v370_v4 }
 0x3e1   :  { %v377_v6 = vpop.xlane.xlu0 %376 }
 0x3e2   :  { %v380_v7 = vmul.f32 0.0625, %v377_v6 }
 0x3e3   :  { %v379_v8 = vpop.xlane.xlu1 %378 }
 0x3e4   :  { %v382_v10 = vsub.f32 %v367_v1, %v380_v7  ;;  %v381_v11 = vmul.f32 0.0625, %v379_v8 }
 0x3e6   :  { %v383_v12 = vsub.f32 %v370_v4, %v381_v11  ;;  %v390_v13 = vmul.f32 %v464_v9, %v382_v10 }
 0x3e8   :  { %v392_v14 = vmul.f32 %v390_v13, %v390_v13  ;;  %v391_v15 = vmul.f32 %v464_v9, %v383_v12 }
 0x3ea   :  { %394 = vadd.xlane.f32.xlu0 %v392_v14  ;;  %v393_v16 = vmul.f32 %v391_v15, %v391_v15 }
 0x3ec   :  { %396 = vadd.xlane.f32.xlu1 %v393_v16 }
 0x477   :  { %v395_v17 = vpop.xlane.xlu0 %394 }
 0x478   :  { %v398_v18 = vmul.f32 0.0625, %v395_v17 }
 0x479   :  { %v397_v19 = vpop.xlane.xlu1 %396 }
 0x47a   :  { %v400_v20 = vadd.f32 1e-05, %v398_v18  ;;  %v399_v21 = vmul.f32 0.0625, %v397_v19 }
 0x47c   :  { %560 = vrsqrt.f32 %v400_v20  ;;  %v401_v22 = vadd.f32 1e-05, %v399_v21 }
 0x47e   :  { %562 = vrsqrt.f32 %v401_v22 }
 0x486   :  { %v561_v23 = vpop.eup %560 }
 0x487   :  { %v404_v25 = vmul.f32 %v561_v23, %v390_v13 }
 0x488   :  { %v563_v26 = vpop.eup %562 }
 0x489   :  { %v405_v28 = vmul.f32 %v563_v26, %v391_v15  ;;  %v412_v29 = vmul.f32 %v465_v24, %v404_v25 }
 0x48b   :  { %v413_v30 = vmul.f32 %v465_v24, %v405_v28  ;;  %v420_v31 = vadd.f32 %v466_v27, %v412_v29 }
 0x48d   :  { %v421_v32 = vadd.f32 %v466_v27, %v413_v30  ;;  %422 = vst [vmem:[#allocation8] sm:$0xff] %v420_v31 }
 0x48f   :  { %423 = vst [vmem:[#allocation8 + $0x8] sm:$0xff] %v421_v32 }
 0x490   :  { %641 = shalt.err (!%p638_p0)
}
 0x491   :  { %s642_s9 = scalar_lea.hbm %s845_s11, 256 }
 0x492   :  { %p643_p1 = scmp.ne.s32.totalorder %s845_s11, %s642_s9  ;;  %p646_p2 = scmp.lt.u32.totalorder %s642_s9, %s845_s11 }
 0x494   :  { %p648_p3 = pnand %p646_p2, %p643_p1 }
 0x496   :  { %651 = shalt.err (!%p648_p3)
}
 0x497   :  { %s666_s15 = smov 128   ;;  %s667_s16 = smov 8  }
 0x498   :  { %435 = dma.vmem_to_hbm [thread:$0]  %s430_s25, 256, %s845_s11, [#allocation4], %s666_s15, %s666_s15, %s667_s16  }
 0x499   :  { %656 = dma.done.wait [#allocation4], 256  }
 0x49a   :  { %657 = vsyncadd [#allocation4], 4294967040 }
 0x49b   :  { %439 = vsyncpa [#allocation3], 1 }
 0x49c   :  { %440 = vsyncpa [#allocation6], 1 }
 0x49d   :  { %441 = vsyncpa [#allocation4], 1 }

// kernel: tpu_custom_call.1
= control target key start
LH: loop header
LB: loop body
LE: loop exit
PB: predicated region body
PF: predicated region fallthrough
CT: control target
= control target key end

     0   :  { %16 = vsyncpa [#allocation3], 0  ;;  %s834_s0 = inlined_call_operand.hbm [shape: bf16[16,128], index: 0, kind: input, shape index: {}]   ;;  %s835_s1 = inlined_call_operand.hbm [shape: bf16[128,128], index: 1, kind: input, shape index: {}]   ;;  %s836_s2 = inlined_call_operand.vmem [shape: f32[1,128], index: 2, kind: input, shape index: {}]   ;;  %s837_s3 = inlined_call_operand.vmem [shape: f32[1,128], index: 3, kind: input, shape index: {}]   ;;  %s838_s4 = inlined_call_operand.vmem [shape: f32[1,128], index: 4, kind: input, shape index: {}]   ;;  %s839_s5 = inlined_call_operand.vmem [shape: f32[1,128], index: 5, kind: input, shape index: {}]   ;;  %s840_s6 = inlined_call_operand.hbm [shape: bf16[128,128], index: 6, kind: input, shape index: {}]   ;;  %s841_s7 = inlined_call_operand.vmem [shape: f32[1,128], index: 7, kind: input, shape index: {}]   ;;  %s842_s8 = inlined_call_operand.vmem [shape: f32[1,128], index: 8, kind: input, shape index: {}]   ;;  %s843_s9 = inlined_call_operand.vmem [shape: f32[1,128], index: 9, kind: input, shape index: {}]   ;;  %s844_s10 = inlined_call_operand.vmem [shape: f32[1,128], index: 10, kind: input, shape index: {}]   ;;  %s845_s11 = inlined_call_operand.hbm [shape: f32[16,128], index: 11, kind: output, shape index: {}]  }
   0x1   :  { %17 = vsyncpa [#allocation6], 0 }
   0x2   :  { %18 = vsyncpa [#allocation4], 0  ;;  %s658_s17 = smov [#allocation5]   ;;  %s659_s19 = smov [#allocation2]  }
   0x3   :  { %s36_s18 = sshll.u32 %s658_s17, 4  ;;  %s24_s20 = sshll.u32 %s659_s19, 4  ;;  %s37_s18 = int_to_ptr.vmem [resolvable:$true] %s36_s18  ;;  %s728_s20 = int_to_ptr.vmem [resolvable:$true] %s24_s20 }
   0x4   :  { %s564_s23 = scalar_lea.hbm %s835_s1, 1024 }
   0x5   :  { %p565_p0 = scmp.ne.s32.totalorder %s835_s1, %s564_s23  ;;  %p568_p1 = scmp.lt.u32.totalorder %s564_s23, %s835_s1 }
   0x7   :  { %p570_p2 = pnand %p568_p1, %p565_p0 }
   0x9   :  { %573 = shalt.err (!%p570_p2)
}
   0xa   :  { %s574_s28 = scalar_lea.vmem %s37_s18, 1024  ;;  %p579_p4 = scmp.lt.s32.totalorder %s37_s18, %s37_s18 }
   0xb   :  { %p575_p3 = scmp.ne.s32.totalorder %s37_s18, %s574_s28  ;;  %p580_p5 = scmp.lt.s32.totalorder %s574_s28, %s574_s28 }
   0xd   :  { %p581_p6 = por %p580_p5, %p579_p4 }
   0xf   :  { %p582_p7 = pnand %p581_p6, %p575_p3 }
  0x11   :  { %585 = shalt.err (!%p582_p7)
}
  0x12   :  { %s660_s29 = smov 64   ;;  %s661_s30 = smov 4  }
  0x13   :  { %42 = dma.hbm_to_vmem [thread:$0]  %s835_s1, 1024, %s37_s18, [#allocation6], %s660_s29, %s660_s29, %s661_s30  }
  0x14   :  { %s586_s16 = scalar_lea.hbm %s834_s0, 128 }
  0x15   :  { %p587_p8 = scmp.ne.s32.totalorder %s834_s0, %s586_s16  ;;  %p590_p9 = scmp.lt.u32.totalorder %s586_s16, %s834_s0 }
  0x17   :  { %p592_p10 = pnand %p590_p9, %p587_p8 }
  0x19   :  { %595 = shalt.err (!%p592_p10)
}
  0x1a   :  { %s596_s23 = scalar_lea.vmem %s728_s20, 128  ;;  %p601_p12 = scmp.lt.s32.totalorder %s728_s20, %s728_s20 }
  0x1b   :  { %p597_p11 = scmp.ne.s32.totalorder %s728_s20, %s596_s23  ;;  %p602_p13 = scmp.lt.s32.totalorder %s596_s23, %s596_s23 }
  0x1d   :  { %p603_p0 = por %p602_p13, %p601_p12 }
  0x1f   :  { %p604_p1 = pnand %p603_p0, %p597_p11 }
  0x21   :  { %607 = shalt.err (!%p604_p1)
}
  0x22   :  { %30 = dma.hbm_to_vmem [thread:$0]  %s834_s0, 128, %s728_s20, [#allocation3], %s660_s29, %s660_s29, %s661_s30  }
  0x23   :  { %s662_s24 = smov [#allocation7]   ;;  %s608_s28 = scalar_lea.hbm %s840_s6, 1024 }
  0x24   :  { %s56_s25 = sshll.u32 %s662_s24, 4  ;;  %p609_p2 = scmp.ne.s32.totalorder %s840_s6, %s608_s28  ;;  %s57_s25 = int_to_ptr.vmem [resolvable:$true] %s56_s25 }
  0x25   :  { %p612_p3 = scmp.lt.u32.totalorder %s608_s28, %s840_s6 }
  0x27   :  { %p614_p4 = pnand %p612_p3, %p609_p2 }
  0x29   :  { %617 = shalt.err (!%p614_p4)
}
  0x2a   :  { %s618_s16 = scalar_lea.vmem %s57_s25, 1024  ;;  %p623_p6 = scmp.lt.s32.totalorder %s57_s25, %s57_s25 }
  0x2b   :  { %p619_p5 = scmp.ne.s32.totalorder %s57_s25, %s618_s16  ;;  %p624_p7 = scmp.lt.s32.totalorder %s618_s16, %s618_s16 }
  0x2d   :  { %p625_p8 = por %p624_p7, %p623_p6 }
  0x2f   :  { %p626_p9 = pnand %p625_p8, %p619_p5 }
  0x31   :  { %629 = shalt.err (!%p626_p9)
}
  0x32   :  { %62 = dma.hbm_to_vmem [thread:$0]  %s840_s6, 1024, %s57_s25, [#allocation6], %s660_s29, %s660_s29, %s661_s30  }
  0x33   :  { %652 = dma.done.wait [#allocation3], 128  }
  0x34   :  { %653 = vsyncadd [#allocation3], 4294967168 }
  0x35   :  { %654 = dma.done.wait [#allocation6], 2048  }
  0x36   :  { %655 = vsyncadd [#allocation6], 4294965248  ;;  %v663_v0 = vmov 0.0   ;;  %vm664_vm0 = vmmov 0   ;;  %v535_v1 = vld [vmem:[#allocation5] sm:$0xff]   ;;  %v536_v2 = vld [vmem:[#allocation5 + $0x8] sm:$0xff]  }
  0x37   :  { %485 = vmatprep.subr.bf16.mxu0 %v663_v0  ;;  %501 = vmatprep.mubr.msk.bf16.mxu0 %vm664_vm0, %v663_v0  ;;  %v537_v3 = vld [vmem:[#allocation5 + $0x10] sm:$0xff]   ;;  %v538_v4 = vld [vmem:[#allocation5 + $0x18] sm:$0xff]   ;;  %v539_v5 = vld [vmem:[#allocation5 + $0x20] sm:$0xff]   ;;  %s665_s24 = smov [#allocation8]  }
  0x38   :  { %505 = vmatprep.subr.bf16.mxu1 %v663_v0  ;;  %521 = vmatprep.mubr.msk.bf16.mxu1 %vm664_vm0, %v663_v0  ;;  %v540_v6 = vld [vmem:[#allocation5 + $0x28] sm:$0xff]   ;;  %v541_v7 = vld [vmem:[#allocation5 + $0x30] sm:$0xff]   ;;  %v542_v8 = vld [vmem:[#allocation5 + $0x38] sm:$0xff]   ;;  %s429_s25 = sshll.u32 %s665_s24, 4  ;;  %s430_s25 = int_to_ptr.vmem [resolvable:$true] %s429_s25 }
  0x39   :  { %486 = vmatpush3.bf16.msra.mxu0 %v535_v1  ;;  %v543_v9 = vld [vmem:[#allocation2] sm:$0xff]   ;;  %v544_v28 = vld [vmem:[#allocation7] sm:$0xff]   ;;  %v545_v29 = vld [vmem:[#allocation7 + $0x8] sm:$0xff]   ;;  %s630_s26 = scalar_lea.vmem %s430_s25, 256  ;;  %p635_p11 = scmp.lt.s32.totalorder %s430_s25, %s430_s25 }
  0x3a   :  { %487 = vmatprep.subr.bf16.mxu0 %v663_v0  ;;  %v442_v10 = vld [vmem:[%s836_s2] ss:$0 sm:$0xff]  ;;  %506 = vmatpush3.bf16.msra.mxu1 %v544_v28  ;;  %v546_v30 = vld [vmem:[#allocation7 + $0x10] sm:$0xff]   ;;  %v548_v32 = vld [vmem:[#allocation7 + $0x20] sm:$0xff]   ;;  %p631_p10 = scmp.ne.s32.totalorder %s430_s25, %s630_s26  ;;  %p636_p12 = scmp.lt.s32.totalorder %s630_s26, %s630_s26 }
  0x3b   :  { %v452_v19 = vld [vmem:[%s839_s5] ss:$0 sm:$0xff]  ;;  %507 = vmatprep.subr.bf16.mxu1 %v663_v0  ;;  %v549_v33 = vld [vmem:[#allocation7 + $0x28] sm:$0xff]   ;;  %v550_v34 = vld [vmem:[#allocation7 + $0x30] sm:$0xff]  }
  0x3c   :  { %v547_v31 = vld [vmem:[#allocation7 + $0x18] sm:$0xff]   ;;  %p637_p13 = por %p636_p12, %p635_p11 }
  0x3d   :  { %488 = vmatpush3.bf16.msra.mxu0 %v536_v2  ;;  %v551_v35 = vld [vmem:[#allocation7 + $0x38] sm:$0xff]  }
  0x3e   :  { %489 = vmatprep.subr.bf16.mxu0 %v663_v0  ;;  %508 = vmatpush3.bf16.msra.mxu1 %v545_v29  ;;  %v453_v43 = vld [vmem:[%s837_s3] ss:$0 sm:$0xff]  ;;  %p638_p0 = pnand %p637_p13, %p631_p10 }
  0x3f   :  { %509 = vmatprep.subr.bf16.mxu1 %v663_v0  ;;  %v454_v45 = vld [vmem:[%s838_s4] ss:$0 sm:$0xff] }
  0x40   :  { %v455_v63 = vld [vmem:[%s841_s7] ss:$0 sm:$0xff] }
  0x41   :  { %490 = vmatpush3.bf16.msra.mxu0 %v537_v3 }
  0x42   :  { %491 = vmatprep.subr.bf16.mxu0 %v663_v0  ;;  %510 = vmatpush3.bf16.msra.mxu1 %v546_v30 }
  0x43   :  { %511 = vmatprep.subr.bf16.mxu1 %v663_v0 }
  0x45   :  { %492 = vmatpush3.bf16.msra.mxu0 %v538_v4 }
  0x46   :  { %493 = vmatprep.subr.bf16.mxu0 %v663_v0  ;;  %512 = vmatpush3.bf16.msra.mxu1 %v547_v31 }
  0x47   :  { %513 = vmatprep.subr.bf16.mxu1 %v663_v0 }
  0x49   :  { %494 = vmatpush3.bf16.msra.mxu0 %v539_v5 }
  0x4a   :  { %495 = vmatprep.subr.bf16.mxu0 %v663_v0  ;;  %514 = vmatpush3.bf16.msra.mxu1 %v548_v32 }
  0x4b   :  { %515 = vmatprep.subr.bf16.mxu1 %v663_v0 }
  0x4d   :  { %496 = vmatpush3.bf16.msra.mxu0 %v540_v6 }
  0x4e   :  { %497 = vmatprep.subr.bf16.mxu0 %v663_v0  ;;  %516 = vmatpush3.bf16.msra.mxu1 %v549_v33 }
  0x4f   :  { %517 = vmatprep.subr.bf16.mxu1 %v663_v0 }
  0x51   :  { %498 = vmatpush3.bf16.msra.mxu0 %v541_v7 }
  0x52   :  { %499 = vmatprep.subr.bf16.mxu0 %v663_v0  ;;  %518 = vmatpush3.bf16.msra.mxu1 %v550_v34 }
  0x53   :  { %519 = vmatprep.subr.bf16.mxu1 %v663_v0 }
  0x55   :  { %500 = vmatpush3.bf16.msra.mxu0 %v542_v8 }
  0x56   :  { %520 = vmatpush3.bf16.msra.mxu1 %v551_v35 }
  0x58   :  { %502 = vmatmul.mubr.bf16.vlgmr.msra.gmra.mrb[0].mxu0 %v543_v9  ;;  %v464_v9 = vld [vmem:[%s844_s10] ss:$0 sm:$0xff] }
 0x12b   :  { %v194_v11 = vpop.f32.mrb[0].mxu0 }
 0x12c   :  { %v195_v12 = vadd.f32 %v442_v10, %v194_v11  ;;  %v503_v13 = vpop.f32.mrb[1].mxu0 }
 0x12d   :  { %v197_v14 = vpop.f32.mrb[2].mxu0 }
 0x12e   :  { %204 = vadd.xlane.f32.xlu0 %v195_v12  ;;  %v504_v15 = vpop.f32.mrb[3].mxu0  ;;  %v198_v16 = vadd.f32 %v442_v10, %v197_v14 }
 0x132   :  { %206 = vadd.xlane.f32.xlu0 %v198_v16 }
 0x1bb   :  { %v205_v17 = vpop.xlane.xlu0 %204 }
 0x1bc   :  { %v208_v18 = vmul.f32 0.03125, %v205_v17 }
 0x1be   :  { %v210_v20 = vsub.f32 %v195_v12, %v208_v18 }
 0x1bf   :  { %v207_v21 = vpop.xlane.xlu0 %206 }
 0x1c0   :  { %v209_v22 = vmul.f32 0.03125, %v207_v21  ;;  %v218_v23 = vmul.f32 %v452_v19, %v210_v20 }
 0x1c2   :  { %v211_v24 = vsub.f32 %v198_v16, %v209_v22  ;;  %v220_v25 = vmul.f32 %v218_v23, %v218_v23 }
 0x1c4   :  { %222 = vadd.xlane.f32.xlu1 %v220_v25  ;;  %v219_v26 = vmul.f32 %v452_v19, %v211_v24  ;;  %v465_v24 = vld [vmem:[%s842_s8] ss:$0 sm:$0xff] }
 0x1c6   :  { %v221_v27 = vmul.f32 %v219_v26, %v219_v26 }
 0x1c8   :  { %224 = vadd.xlane.f32.xlu1 %v221_v27  ;;  %v466_v27 = vld [vmem:[%s843_s9] ss:$0 sm:$0xff] }
 0x251   :  { %v223_v36 = vpop.xlane.xlu1 %222 }
 0x252   :  { %v226_v37 = vmul.f32 0.03125, %v223_v36 }
 0x254   :  { %v228_v38 = vadd.f32 1e-05, %v226_v37 }
 0x255   :  { %v225_v39 = vpop.xlane.xlu1 %224 }
 0x256   :  { %552 = vrsqrt.f32 %v228_v38  ;;  %v227_v40 = vmul.f32 0.03125, %v225_v39 }
 0x258   :  { %v229_v41 = vadd.f32 1e-05, %v227_v40 }
 0x25a   :  { %554 = vrsqrt.f32 %v229_v41 }
 0x260   :  { %v553_v42 = vpop.eup %552 }
 0x261   :  { %v232_v44 = vmul.f32 %v553_v42, %v218_v23 }
 0x263   :  { %v240_v46 = vmul.f32 %v453_v43, %v232_v44 }
 0x264   :  { %v555_v47 = vpop.eup %554 }
 0x265   :  { %v233_v48 = vmul.f32 %v555_v47, %v219_v26  ;;  %v248_v49 = vadd.f32 %v454_v45, %v240_v46 }
 0x267   :  { %v241_v50 = vmul.f32 %v453_v43, %v233_v48  ;;  %v252_v51 = vmul.f32 0.70710677, %v248_v49  ;;  %v250_v57 = vmul.f32 0.5, %v248_v49 }
 0x269   :  { %v249_v52 = vadd.f32 %v454_v45, %v241_v50  ;;  %556 = verf.f32 %v252_v51 }
 0x26b   :  { %v253_v53 = vmul.f32 0.70710677, %v249_v52  ;;  %v251_v58 = vmul.f32 0.5, %v249_v52 }
 0x26d   :  { %558 = verf.f32 %v253_v53 }
 0x273   :  { %v557_v54 = vpop.eup %556 }
 0x274   :  { %v256_v55 = vadd.f32 1.0, %v557_v54 }
 0x276   :  { %v258_v60 = vmul.f32 %v256_v55, %v250_v57 }
 0x277   :  { %v559_v56 = vpop.eup %558 }
 0x278   :  { %v257_v59 = vadd.f32 1.0, %v559_v56 }
 0x27a   :  { %v259_v61 = vmul.f32 %v257_v59, %v251_v58 }
 0x27c   :  { %v260_v62 = vpack.c.bf16 %v259_v61, %v258_v60 }
 0x27e   :  { %522 = vmatmul.mubr.bf16.vlgmr.msra.gmra.mrb[0].mxu1 %v260_v62 }
 0x351   :  { %v366_v0 = vpop.f32.mrb[0].mxu1 }
 0x352   :  { %v367_v1 = vadd.f32 %v455_v63, %v366_v0  ;;  %v523_v2 = vpop.f32.mrb[1].mxu1 }
 0x353   :  { %v369_v3 = vpop.f32.mrb[2].mxu1 }
 0x354   :  { %v370_v4 = vadd.f32 %v455_v63, %v369_v3  ;;  %376 = vadd.xlane.f32.xlu0 %v367_v1  ;;  %v524_v5 = vpop.f32.mrb[3].mxu1 }
 0x356   :  { %378 = vadd.xlane.f32.xlu1 %v370_v4 }
 0x3e1   :  { %v377_v6 = vpop.xlane.xlu0 %376 }
 0x3e2   :  { %v380_v7 = vmul.f32 0.0625, %v377_v6 }
 0x3e3   :  { %v379_v8 = vpop.xlane.xlu1 %378 }
 0x3e4   :  { %v382_v10 = vsub.f32 %v367_v1, %v380_v7  ;;  %v381_v11 = vmul.f32 0.0625, %v379_v8 }
 0x3e6   :  { %v383_v12 = vsub.f32 %v370_v4, %v381_v11  ;;  %v390_v13 = vmul.f32 %v464_v9, %v382_v10 }
 0x3e8   :  { %v392_v14 = vmul.f32 %v390_v13, %v390_v13  ;;  %v391_v15 = vmul.f32 %v464_v9, %v383_v12 }
 0x3ea   :  { %394 = vadd.xlane.f32.xlu0 %v392_v14  ;;  %v393_v16 = vmul.f32 %v391_v15, %v391_v15 }
 0x3ec   :  { %396 = vadd.xlane.f32.xlu1 %v393_v16 }
 0x477   :  { %v395_v17 = vpop.xlane.xlu0 %394 }
 0x478   :  { %v398_v18 = vmul.f32 0.0625, %v395_v17 }
 0x479   :  { %v397_v19 = vpop.xlane.xlu1 %396 }
 0x47a   :  { %v400_v20 = vadd.f32 1e-05, %v398_v18  ;;  %v399_v21 = vmul.f32 0.0625, %v397_v19 }
 0x47c   :  { %560 = vrsqrt.f32 %v400_v20  ;;  %v401_v22 = vadd.f32 1e-05, %v399_v21 }
 0x47e   :  { %562 = vrsqrt.f32 %v401_v22 }
 0x486   :  { %v561_v23 = vpop.eup %560 }
 0x487   :  { %v404_v25 = vmul.f32 %v561_v23, %v390_v13 }
 0x488   :  { %v563_v26 = vpop.eup %562 }
 0x489   :  { %v405_v28 = vmul.f32 %v563_v26, %v391_v15  ;;  %v412_v29 = vmul.f32 %v465_v24, %v404_v25 }
 0x48b   :  { %v413_v30 = vmul.f32 %v465_v24, %v405_v28  ;;  %v420_v31 = vadd.f32 %v466_v27, %v412_v29 }
 0x48d   :  { %v421_v32 = vadd.f32 %v466_v27, %v413_v30  ;;  %422 = vst [vmem:[#allocation8] sm:$0xff] %v420_v31 }
 0x48f   :  { %423 = vst [vmem:[#allocation8 + $0x8] sm:$0xff] %v421_v32 }
 0x490   :  { %641 = shalt.err (!%p638_p0)
}
 0x491   :  { %s642_s9 = scalar_lea.hbm %s845_s11, 256 }
 0x492   :  { %p643_p1 = scmp.ne.s32.totalorder %s845_s11, %s642_s9  ;;  %p646_p2 = scmp.lt.u32.totalorder %s642_s9, %s845_s11 }
 0x494   :  { %p648_p3 = pnand %p646_p2, %p643_p1 }
 0x496   :  { %651 = shalt.err (!%p648_p3)
}
 0x497   :  { %s666_s15 = smov 128   ;;  %s667_s16 = smov 8  }
 0x498   :  { %435 = dma.vmem_to_hbm [thread:$0]  %s430_s25, 256, %s845_s11, [#allocation4], %s666_s15, %s666_s15, %s667_s16  }
 0x499   :  { %656 = dma.done.wait [#allocation4], 256  }
 0x49a   :  { %657 = vsyncadd [#allocation4], 4294967040 }
 0x49b   :  { %439 = vsyncpa [#allocation3], 1 }
 0x49c   :  { %440 = vsyncpa [#allocation6], 1 }
 0x49d   :  { %441 = vsyncpa [#allocation4], 1 }

</bundles_post_ra>
